<compile_context>
chip_gen: v6e
topology: v6e:2x2x1
jax: 0.10.0
libtpu: 0.0.40
codegen_flags: <defaults>
</compile_context>

<pallas_src>
import jax
import jax.numpy as jnp
from jax.experimental import pallas as pl
from jax.experimental.pallas import tpu as pltpu


# ----------------------------- kernels ------------------------------------


def _fwd_kernel(idx_ref, table_ref, logits_ref):
    # Embedding lookup only (targets is None path), all rows in one shot.
    # idx_ref:    (N, 1) int32 in VMEM
    # table_ref:  (V, V) in VMEM
    # logits_ref: (N, V)
    N, V = logits_ref.shape
    col = jax.lax.broadcasted_iota(jnp.int32, (N, V), 1)
    onehot = (col == idx_ref[...]).astype(table_ref.dtype)          # (N, V)
    logits_ref[...] = jnp.dot(
        onehot, table_ref[...], preferred_element_type=jnp.float32
    ).astype(logits_ref.dtype)


def _fwd_ce_kernel(it_ref, table_ref, logits_ref, loss_ref):
    # Embedding lookup + mean cross-entropy, all rows in one shot.
    # it_ref:     (N, 2) int32 in VMEM -- column 0 = idx, column 1 = targets
    # table_ref:  (V, V) in VMEM
    # logits_ref: (N, V)
    # loss_ref:   (1,)   f32 in SMEM
    N, V = logits_ref.shape
    col = jax.lax.broadcasted_iota(jnp.int32, (N, V), 1)

    idx_col = it_ref[:, 0:1]                                          # (N, 1)
    tgt_col = it_ref[:, 1:2]                                          # (N, 1)

    # Gather via one-hot matmul on the MXU.
    onehot = (col == idx_col).astype(table_ref.dtype)                 # (N, V)
    logits = jnp.dot(onehot, table_ref[...],
                     preferred_element_type=jnp.float32)              # (N, V) f32
    logits_ref[...] = logits.astype(logits_ref.dtype)

    # Batched cross-entropy: logsumexp(row) - row[target], mean over N rows.
    m = jnp.max(logits, axis=-1, keepdims=True)                       # (N, 1)
    lse = jnp.log(jnp.sum(jnp.exp(logits - m), axis=-1, keepdims=True)) + m
    tgt_logit = jnp.sum(
        jnp.where(col == tgt_col, logits, 0.0),
        axis=-1, keepdims=True)                                       # (N, 1)
    per_row = lse - tgt_logit                                         # (N, 1)
    loss_ref[0] = jnp.sum(per_row) * (1.0 / N)                        # scalar -> SMEM


# ----------------------------- wrapper -------------------------------------


def bigram_forward(table, idx, targets=None):
    """Pallas equivalent of BigramLanguageModel.forward."""
    V = table.shape[0]
    B, T = idx.shape
    N = B * T

    vmem = pltpu.MemorySpace.VMEM
    smem = pltpu.MemorySpace.SMEM

    if targets is None:
        idx_col = idx.reshape(N, 1).astype(jnp.int32)
        logits = pl.pallas_call(
            _fwd_kernel,
            out_shape=jax.ShapeDtypeStruct((N, V), table.dtype),
            in_specs=[
                pl.BlockSpec(memory_space=vmem),   # idx (N, 1)
                pl.BlockSpec(memory_space=vmem),   # table (V, V)
            ],
            out_specs=pl.BlockSpec(memory_space=vmem),
        )(idx_col, table)
        return logits.reshape(B, T, V), None

    # Fuse idx and targets into one (N, 2) int32 slab -> a single small DMA.
    it = jnp.stack(
        [idx.reshape(N), targets.reshape(N)], axis=1).astype(jnp.int32)

    logits, loss = pl.pallas_call(
        _fwd_ce_kernel,
        out_shape=(
            jax.ShapeDtypeStruct((N, V), table.dtype),
            jax.ShapeDtypeStruct((1,), jnp.float32),
        ),
        in_specs=[
            pl.BlockSpec(memory_space=vmem),       # fused idx/targets (N, 2)
            pl.BlockSpec(memory_space=vmem),       # table (V, V)
        ],
        out_specs=(
            pl.BlockSpec(memory_space=vmem),       # logits (N, V), lane-dense
            pl.BlockSpec(memory_space=smem),       # scalar loss
        ),
    )(it, table)
    return logits, loss[0]


# TODO(synk): for large vocabularies (table no longer comfortably VMEM-resident,
# earlier on v7x's 64 MiB VMEM) switch to a scalar-prefetch row gather
# (PrefetchScalarGridSpec with a (pl.Element(1), V) table BlockSpec indexed by
# the prefetched idx) or an HBM-resident table (memory_space=pl.ANY) with
# batched row make_async_copy DMAs -- N*V traffic instead of V^2.


# ----------------------------- reference -----------------------------------


def _reference(table, idx, targets):
    logits = table[idx]                              # (B, T, V)
    B, T, V = logits.shape
    lg = logits.reshape(B * T, V).astype(jnp.float32)
    tg = targets.reshape(B * T)
    lse = jax.nn.logsumexp(lg, axis=-1)
    picked = jnp.take_along_axis(lg, tg[:, None], axis=-1)[:, 0]
    return lg, jnp.mean(lse - picked)


# ------------------------------ main ----------------------------------------


if __name__ == "__main__":
    vocab_size = 128
    B, T = 2, 8

    key = jax.random.PRNGKey(0)
    k_tab, k_idx, k_tgt = jax.random.split(key, 3)

    # Deterministic "trained" parameters (nn.Embedding(vocab_size, vocab_size))
    table = jax.random.normal(k_tab, (vocab_size, vocab_size), dtype=jnp.float32)
    idx = jax.random.randint(k_idx, (B, T), 0, vocab_size, dtype=jnp.int32)
    targets = jax.random.randint(k_tgt, (B, T), 0, vocab_size, dtype=jnp.int32)

    # targets=None path: logits only
    logits_no_t, loss_no_t = bigram_forward(table, idx, None)
    jax.block_until_ready(logits_no_t)
    assert logits_no_t.shape == (B, T, vocab_size)
    assert loss_no_t is None

    # targets path: reshaped logits + mean cross-entropy loss
    logits, loss = bigram_forward(table, idx, targets)
    logits = jax.block_until_ready(logits)
    loss = jax.block_until_ready(loss)
    assert logits.shape == (B * T, vocab_size)

    ref_logits, ref_loss = _reference(table, idx, targets)
    assert jnp.allclose(logits, ref_logits, atol=1e-5, rtol=1e-5)
    assert jnp.allclose(loss, ref_loss, atol=1e-5, rtol=1e-5)

    # Check the no-targets logits against the gather reference too.
    assert jnp.allclose(logits_no_t.reshape(B * T, vocab_size), ref_logits,
                        atol=1e-5, rtol=1e-5)

    print("KERNEL_OK")
</pallas_src>

<mosaic_0001>
module attributes {stable_mosaic.version = 11 : i64} {
  func.func @_fwd_kernel(%arg0: memref<16x1xi32, #tpu.memory_space<vmem>>, %arg1: memref<128x128xf32, #tpu.memory_space<vmem>>, %arg2: memref<16x128xf32, #tpu.memory_space<vmem>>) attributes {dimension_semantics = [], scalar_prefetch = 0 : i64, scratch_operands = 0 : i64, tpu.core_type = #tpu.core_type<tc>} {
    %0 = tpu.iota {dimensions = array<i32: 1>} : vector<16x128xi32>
    %c0 = arith.constant 0 : index
    %c0_0 = arith.constant 0 : index
    %1 = vector.load %arg0[%c0, %c0_0] : memref<16x1xi32, #tpu.memory_space<vmem>>, vector<16x1xi32>
    %2 = vector.broadcast %1 : vector<16x1xi32> to vector<16x128xi32>
    %3 = arith.cmpi eq, %0, %2 : vector<16x128xi32>
    %4 = arith.extui %3 : vector<16x128xi1> to vector<16x128xi32>
    %5 = arith.sitofp %4 : vector<16x128xi32> to vector<16x128xf32>
    %c0_1 = arith.constant 0 : index
    %c0_2 = arith.constant 0 : index
    %6 = vector.load %arg1[%c0_1, %c0_2] : memref<128x128xf32, #tpu.memory_space<vmem>>, vector<128x128xf32>
    %cst = arith.constant dense<0.000000e+00> : vector<16x128xf32>
    %7 = tpu.matmul %5, %6, %cst {dimension_numbers = #tpu.dot_dimension_numbers<[1], [0], [0], [1], [0, 0, 1, 1], [], []>} : vector<16x128xf32>, vector<128x128xf32>, vector<16x128xf32> -> vector<16x128xf32>
    %c0_3 = arith.constant 0 : index
    %c0_4 = arith.constant 0 : index
    %8 = vector.load %arg2[%c0_3, %c0_4] : memref<16x128xf32, #tpu.memory_space<vmem>>, vector<16x128xf32>
    tpu.vector_store %arg2[%c0_3, %c0_4], %7 {strides = array<i32>} : memref<16x128xf32, #tpu.memory_space<vmem>>, vector<16x128xf32>,
    return
  }
}

</mosaic_0001>

<bundles_post_ra>
// kernel: tpu_custom_call.1
= control target key start
LH: loop header
LB: loop body
LE: loop exit
PB: predicated region body
PF: predicated region fallthrough
CT: control target
= control target key end

     0   :  { %7 = vsyncpa [#allocation3], 0  ;;  %s299_s0 = inlined_call_operand.vmem [shape: s32[16,1], index: 0, kind: input, shape index: {}]   ;;  %s300_s1 = inlined_call_operand.hbm [shape: f32[128,128], index: 1, kind: input, shape index: {}]   ;;  %s301_s2 = inlined_call_operand.hbm [shape: f32[16,128], index: 2, kind: output, shape index: {}]  }
   0x1   :  { %8 = vsyncpa [#allocation4], 0  ;;  %s260_s9 = smov [#allocation2]  }
   0x2   :  { %s16_s10 = sshll.u32 %s260_s9, 4  ;;  %s17_s10 = int_to_ptr.vmem [resolvable:$true] %s16_s10 }
   0x3   :  { %s224_s11 = scalar_lea.vmem %s17_s10, 2048  ;;  %p229_p1 = scmp.lt.s32.totalorder %s17_s10, %s17_s10 }
   0x4   :  { %p225_p0 = scmp.ne.s32.totalorder %s17_s10, %s224_s11  ;;  %p230_p2 = scmp.lt.s32.totalorder %s224_s11, %s224_s11 }
   0x6   :  { %p231_p3 = por %p230_p2, %p229_p1 }
   0x8   :  { %p232_p4 = pnand %p231_p3, %p225_p0 }
   0xa   :  { %235 = shalt.err (!%p232_p4)
}
   0xb   :  { %s261_s12 = smov 128   ;;  %s262_s13 = smov 8  }
   0xc   :  { %22 = dma.hbm_to_vmem [thread:$0]  %s300_s1, 2048, %s17_s10, [#allocation3], %s261_s12, %s261_s12, %s262_s13  }
   0xd   :  { %256 = dma.done.wait [#allocation3], 2048  }
   0xe   :  { %257 = vsyncadd [#allocation3], 4294965248  ;;  %v263_v0 = vmov 0   ;;  %v28_v1 = vld [vmem:[%s299_s0] sm:$0xff]  ;;  %v57_v2 = vld [vmem:[#allocation2 + $0x78] sm:$0xff]  ;;  %v26_v19 = vlaneseq  ;;  %v264_v22 = vmov 1.0  }
   0xf   :  { %215 = vset.pattern.permute.xlu0 %v263_v0  ;;  %174 = vmatprep.subr.mxu0 %v57_v2  ;;  %v56_v3 = vld [vmem:[#allocation2 + $0x70] sm:$0xff]  ;;  %v29_v4 = vld [vmem:[%s299_s0 + $0x8] sm:$0xff]  ;;  %v54_v6 = vld [vmem:[#allocation2 + $0x60] sm:$0xff]  ;;  %s265_s0 = smov [#allocation5]  }
  0x10   :  { %31 = vperm.xlu0 %215, %v28_v1   ;;  %175 = vmatpush3.msra.mxu0 %v57_v2  ;;  %v55_v5 = vld [vmem:[#allocation2 + $0x68] sm:$0xff]  ;;  %v53_v7 = vld [vmem:[#allocation2 + $0x58] sm:$0xff]  ;;  %v52_v8 = vld [vmem:[#allocation2 + $0x50] sm:$0xff]  ;;  %v27_v20 = vand.u32 127, %v26_v19  ;;  %s140_s1 = sshll.u32 %s265_s0, 4  ;;  %s141_s1 = int_to_ptr.vmem [resolvable:$true] %s140_s1 }
  0x11   :  { %176 = vmatprep.subr.mxu0 %v56_v3  ;;  %v51_v9 = vld [vmem:[#allocation2 + $0x48] sm:$0xff]  ;;  %v50_v10 = vld [vmem:[#allocation2 + $0x40] sm:$0xff]  ;;  %v49_v11 = vld [vmem:[#allocation2 + $0x38] sm:$0xff]  ;;  %s236_s20 = scalar_lea.vmem %s141_s1, 256  ;;  %p241_p6 = scmp.lt.s32.totalorder %s141_s1, %s141_s1 }
  0x12   :  { %177 = vmatpush3.msra.mxu0 %v56_v3  ;;  %v48_v12 = vld [vmem:[#allocation2 + $0x30] sm:$0xff]  ;;  %v47_v13 = vld [vmem:[#allocation2 + $0x28] sm:$0xff]  ;;  %v46_v14 = vld [vmem:[#allocation2 + $0x20] sm:$0xff]  ;;  %p237_p5 = scmp.ne.s32.totalorder %s141_s1, %s236_s20  ;;  %p242_p7 = scmp.lt.s32.totalorder %s236_s20, %s236_s20 }
  0x13   :  { %178 = vmatprep.subr.mxu0 %v55_v5  ;;  %v45_v15 = vld [vmem:[#allocation2 + $0x18] sm:$0xff]  ;;  %v44_v16 = vld [vmem:[#allocation2 + $0x10] sm:$0xff]  ;;  %v43_v17 = vld [vmem:[#allocation2 + $0x8] sm:$0xff] }
  0x14   :  { %34 = vperm.xlu0 %215, %v29_v4   ;;  %179 = vmatpush3.msra.mxu0 %v55_v5  ;;  %v42_v18 = vld [vmem:[#allocation2] sm:$0xff]  ;;  %p243_p8 = por %p242_p7, %p241_p6 }
  0x15   :  { %180 = vmatprep.subr.mxu0 %v54_v6 }
  0x16   :  { %181 = vmatpush3.msra.mxu0 %v54_v6  ;;  %p244_p9 = pnand %p243_p8, %p237_p5 }
  0x17   :  { %182 = vmatprep.subr.mxu0 %v53_v7 }
  0x18   :  { %183 = vmatpush3.msra.mxu0 %v53_v7 }
  0x19   :  { %184 = vmatprep.subr.mxu0 %v52_v8 }
  0x1a   :  { %185 = vmatpush3.msra.mxu0 %v52_v8 }
  0x1b   :  { %186 = vmatprep.subr.mxu0 %v51_v9 }
  0x1c   :  { %187 = vmatpush3.msra.mxu0 %v51_v9 }
  0x1d   :  { %188 = vmatprep.subr.mxu0 %v50_v10 }
  0x1e   :  { %189 = vmatpush3.msra.mxu0 %v50_v10 }
  0x1f   :  { %190 = vmatprep.subr.mxu0 %v49_v11 }
  0x20   :  { %191 = vmatpush3.msra.mxu0 %v49_v11 }
  0x21   :  { %192 = vmatprep.subr.mxu0 %v48_v12 }
  0x22   :  { %193 = vmatpush3.msra.mxu0 %v48_v12 }
  0x23   :  { %194 = vmatprep.subr.mxu0 %v47_v13 }
  0x24   :  { %195 = vmatpush3.msra.mxu0 %v47_v13 }
  0x25   :  { %196 = vmatprep.subr.mxu0 %v46_v14 }
  0x26   :  { %197 = vmatpush3.msra.mxu0 %v46_v14 }
  0x27   :  { %198 = vmatprep.subr.mxu0 %v45_v15 }
  0x28   :  { %199 = vmatpush3.msra.mxu0 %v45_v15 }
  0x29   :  { %200 = vmatprep.subr.mxu0 %v44_v16 }
  0x2a   :  { %201 = vmatpush3.msra.mxu0 %v44_v16 }
  0x2b   :  { %202 = vmatprep.subr.mxu0 %v43_v17 }
  0x2c   :  { %203 = vmatpush3.msra.mxu0 %v43_v17 }
  0x2d   :  { %204 = vmatprep.subr.mxu0 %v42_v18 }
  0x2e   :  { %205 = vmatpush3.msra.mxu0 %v42_v18 }
  0x8b   :  { %v32_v21 = vpop.permute.xlu0 %31 }
  0x8c   :  { %vm36_vm0 = vcmp.eq.s32.totalorder %v27_v20, %v32_v21 }
  0x8d   :  { %206 = vmatprep.mubr.msk.f32.mxu0 %vm36_vm0, %v264_v22 }
  0x8f   :  { %v35_v23 = vpop.permute.xlu0 %34 }
  0x90   :  { %vm37_vm1 = vcmp.eq.s32.totalorder %v27_v20, %v35_v23 }
  0x91   :  { %207 = vmatmul.mubr.msk.f32.vlgmr.msra.gmra.mxu0 %vm37_vm1, %v264_v22 }
 0x151   :  { %v208_v24 = vpop.f32.mrf.mxu0 }
 0x152   :  { %134 = vst [vmem:[#allocation5 + $0x8] sm:$0xff] %v208_v24 }
 0x153   :  { %v124_v25 = vpop.f32.mrf.mxu0 }
 0x154   :  { %133 = vst [vmem:[#allocation5] sm:$0xff] %v124_v25 }
 0x155   :  { %247 = shalt.err (!%p244_p9)
}
 0x156   :  { %146 = dma.vmem_to_hbm [thread:$0]  %s141_s1, 256, %s301_s2, [#allocation4], %s261_s12, %s261_s12, %s262_s13  }
 0x157   :  { %258 = dma.done.wait [#allocation4], 256  }
 0x158   :  { %259 = vsyncadd [#allocation4], 4294967040 }
 0x159   :  { %150 = vsyncpa [#allocation3], 1 }
 0x15a   :  { %151 = vsyncpa [#allocation4], 1 }

</bundles_post_ra>
